<compile_context>
chip_gen: v7x
topology: tpu7x:2x2x1
jax: 0.10.0
libtpu: 0.0.40
codegen_flags: <defaults>
</compile_context>

<pallas_src>
import functools

import jax
import jax.numpy as jnp
from jax.experimental import pallas as pl
from jax.experimental.pallas import tpu as pltpu


def _round_up(x, m):
    return (x + m - 1) // m * m


# ----------------------------- in-kernel helpers -----------------------------

def _layernorm(x, g, b, eps=1e-12):
    m = jnp.mean(x, axis=-1, keepdims=True)
    v = jnp.mean(jnp.square(x - m), axis=-1, keepdims=True)
    return (x - m) * jax.lax.rsqrt(v + eps) * g + b


# ----------------------- relative-position projection ------------------------

def _rel_proj_kernel(pos_ref, wr_ref, o_ref):
    # (R, D) @ (D, H*Dh), bf16 MXU inputs, f32 accumulation.
    o_ref[...] = jnp.dot(pos_ref[...].astype(jnp.bfloat16), wr_ref[...],
                         preferred_element_type=jnp.float32)


def _project_rel_pos(pos_tab, wr):
    R, _ = pos_tab.shape
    N = wr.shape[1]
    return pl.pallas_call(
        _rel_proj_kernel,
        out_shape=jax.ShapeDtypeStruct((R, N), jnp.float32),
    )(pos_tab, wr)


def _rel_pos_table(seq_len, q_tile, d_model):
    """Sinusoid table for pos_seq[r] = S - r (rows >= 2S zero-padded).

    Padded so every per-q-tile window has lane-friendly length `win`
    (multiple of 128) and the rel_shift roll never reads padded rows.
    """
    win = _round_up(seq_len + q_tile, 128)
    rows = (seq_len - q_tile) + win
    r = jnp.arange(rows)
    pos = (seq_len - r).astype(jnp.float32)
    inv_freq = 1.0 / (10000.0 ** (jnp.arange(0, d_model, 2, dtype=jnp.float32)
                                  / d_model))
    ang = pos[:, None] * inv_freq[None, :]
    tab = jnp.concatenate([jnp.sin(ang), jnp.cos(ang)], axis=-1)
    tab = jnp.where((r < 2 * seq_len)[:, None], tab, 0.0)
    return tab, win


# --------------------------- one XLNet encoder layer --------------------------

def _xlnet_layer_kernel(hq_ref, hfull_ref, rk_ref, segq_ref, segk_ref, mask_ref,
                        wq_ref, wk_ref, wv_ref, wo_ref,
                        rwb_ref, rrb_ref, rsb_ref, segemb_ref,
                        ln1g_ref, ln1b_ref, w1_ref, b1_ref, w2_ref, b2_ref,
                        ln2g_ref, ln2b_ref,
                        out_ref, *, n_head, d_head, seq_len, q_tile, win_len):
    qi = pl.program_id(1)

    hq = hq_ref[0]                                   # (tq, D)  f32, this q tile
    hf = hfull_ref[0]                                # (S,  D)  f32, K/V source
    hq_b = hq.astype(jnp.bfloat16)
    hf_b = hf.astype(jnp.bfloat16)

    # Batched projections (contraction over full D -> MXU friendly).
    q_all = jnp.dot(hq_b, wq_ref[...], preferred_element_type=jnp.float32)  # (tq, H*Dh)
    k_all = jnp.dot(hf_b, wk_ref[...], preferred_element_type=jnp.float32)  # (S,  H*Dh)
    v_all = jnp.dot(hf_b, wv_ref[...], preferred_element_type=jnp.float32)

    # Hoisted bias adds (once, not per head).
    q_rw = q_all + rwb_ref[...]
    q_rr = q_all + rrb_ref[...]
    q_rs = q_all + rsb_ref[...]

    q_rw_b = q_rw.astype(jnp.bfloat16)
    q_rr_b = q_rr.astype(jnp.bfloat16)
    k_b = k_all.astype(jnp.bfloat16)
    v_b = v_all.astype(jnp.bfloat16)

    # Relative-position window for this q tile: rows [S-(qi+1)*tq, ... + win_len).
    start = (seq_len - q_tile) - qi * q_tile
    start = pl.multiple_of(start, q_tile)
    rk_win_b = rk_ref[pl.ds(start, win_len), :].astype(jnp.bfloat16)  # (win, H*Dh)

    seg_same = segq_ref[0] == segk_ref[0]            # (tq,1) vs (1,S) -> (tq,S)
    mask_bias = (mask_ref[0] - 1.0) * 1e9            # (1,S): 0 attend, -1e9 masked
    scale = 1.0 / (d_head ** 0.5)
    roll_shift = win_len - q_tile                    # rel_shift amount (static)

    head_vecs = []
    for h in range(n_head):                          # small, unrolled at trace time
        sl = slice(h * d_head, (h + 1) * d_head)
        # content term AC
        ac = jnp.einsum('qd,kd->qk', q_rw_b[:, sl], k_b[:, sl],
                        preferred_element_type=jnp.float32)            # (tq, S)
        # relative positional term BD: matmul against the 2S table + rel_shift
        bd_full = jnp.einsum('qd,rd->qr', q_rr_b[:, sl], rk_win_b[:, sl],
                             preferred_element_type=jnp.float32)       # (tq, win)
        bd = pltpu.roll(bd_full, roll_shift, axis=1,
                        stride=1, stride_axis=0)[:, :seq_len]          # (tq, S)
        # segment term EF (seg_embed row 0 = same segment, row 1 = different)
        q_s = q_rs[:, sl]
        e_same = jnp.sum(q_s * segemb_ref[0:1, sl], axis=-1, keepdims=True)
        e_diff = jnp.sum(q_s * segemb_ref[1:2, sl], axis=-1, keepdims=True)
        ef = jnp.where(seg_same, e_same, e_diff)

        score = (ac + bd + ef) * scale + mask_bias
        m = jnp.max(score, axis=-1, keepdims=True)
        p = jnp.exp(score - m)
        p = p * pl.reciprocal(jnp.sum(p, axis=-1, keepdims=True), approx=True)

        head_vecs.append(jnp.dot(p.astype(jnp.bfloat16), v_b[:, sl],
                                 preferred_element_type=jnp.float32))  # (tq, Dh)

    # Merged output projection: single (tq, H*Dh) @ (H*Dh, D) matmul.
    attn_cat = jnp.concatenate(head_vecs, axis=-1)
    attn_out = jnp.dot(attn_cat.astype(jnp.bfloat16), wo_ref[...],
                       preferred_element_type=jnp.float32)             # (tq, D)

    # post-attention residual + LayerNorm (dropout = identity in eval mode)
    h1 = _layernorm(attn_out + hq, ln1g_ref[...], ln1b_ref[...])

    # position-wise feed-forward
    # TODO(synk): HF XLNet uses erf-based gelu; tanh approximation used for robust Mosaic lowering.
    ff = jnp.dot(h1.astype(jnp.bfloat16), w1_ref[...],
                 preferred_element_type=jnp.float32) + b1_ref[...]
    ff = jax.nn.gelu(ff, approximate=True)
    ff = jnp.dot(ff.astype(jnp.bfloat16), w2_ref[...],
                 preferred_element_type=jnp.float32) + b2_ref[...]
    out = _layernorm(ff + h1, ln2g_ref[...], ln2b_ref[...])

    out_ref[0] = out.astype(out_ref.dtype)


def _xlnet_layer_call(h, rk, seg_col, seg_row, maskf, lp,
                      *, n_head, d_head, q_tile, win_len):
    B, S, D = h.shape
    n_qt = S // q_tile

    def fullspec(a):
        nd = a.ndim
        return pl.BlockSpec(a.shape, lambda b, q, _n=nd: (0,) * _n)

    weights = [lp['wq'], lp['wk'], lp['wv'], lp['wo'],
               lp['r_w_bias'], lp['r_r_bias'], lp['r_s_bias'], lp['seg_embed'],
               lp['ln1_g'], lp['ln1_b'],
               lp['w1'], lp['b1'], lp['w2'], lp['b2'],
               lp['ln2_g'], lp['ln2_b']]

    in_specs = ([pl.BlockSpec((1, q_tile, D), lambda b, q: (b, q, 0)),   # h, q tile
                 pl.BlockSpec((1, S, D), lambda b, q: (b, 0, 0)),        # h, full (K/V src)
                 fullspec(rk),                                           # rel-pos keys
                 pl.BlockSpec((1, q_tile, 1), lambda b, q: (b, q, 0)),   # seg ids (query)
                 pl.BlockSpec((1, 1, S), lambda b, q: (b, 0, 0)),        # seg ids (key)
                 pl.BlockSpec((1, 1, S), lambda b, q: (b, 0, 0))]        # attention mask
                + [fullspec(w) for w in weights])

    kernel = functools.partial(_xlnet_layer_kernel, n_head=n_head, d_head=d_head,
                               seq_len=S, q_tile=q_tile, win_len=win_len)
    return pl.pallas_call(
        kernel,
        out_shape=jax.ShapeDtypeStruct((B, S, D), jnp.float32),
        grid=(B, n_qt),
        in_specs=in_specs,
        out_specs=pl.BlockSpec((1, q_tile, D), lambda b, q: (b, q, 0)),
        compiler_params=pltpu.CompilerParams(
            dimension_semantics=("parallel", "parallel"),
            vmem_limit_bytes=64 * 1024 * 1024),
    )(h, h, rk, seg_col, seg_row, maskf, *weights)


# --------------------------------- glue / setup -------------------------------

def init_params(key, *, n_layers, vocab, d_model, n_head, d_head, d_inner):
    hd = n_head * d_head
    def init(k, shape, dt=jnp.bfloat16):
        return (0.02 * jax.random.normal(k, shape, jnp.float32)).astype(dt)
    keys = jax.random.split(key, 1 + n_layers)
    # TODO(synk): real module loads 'xlnet-base/large-cased' checkpoint weights.
    params = {'word_emb': init(keys[0], (vocab, d_model), jnp.float32), 'layers': []}
    for li in range(n_layers):
        ks = jax.random.split(keys[1 + li], 11)
        params['layers'].append({
            'wq': init(ks[0], (d_model, hd)),
            'wk': init(ks[1], (d_model, hd)),
            'wv': init(ks[2], (d_model, hd)),
            'wr': init(ks[3], (d_model, hd)),
            'wo': init(ks[4], (hd, d_model)),
            'r_w_bias': init(ks[5], (1, hd), jnp.float32),
            'r_r_bias': init(ks[6], (1, hd), jnp.float32),
            'r_s_bias': init(ks[7], (1, hd), jnp.float32),
            'seg_embed': init(ks[8], (2, hd), jnp.float32),   # row0=same, row1=diff
            'ln1_g': jnp.ones((1, d_model), jnp.float32),
            'ln1_b': jnp.zeros((1, d_model), jnp.float32),
            'w1': init(ks[9], (d_model, d_inner)),
            'b1': jnp.zeros((1, d_inner), jnp.float32),
            'w2': init(ks[10], (d_inner, d_model)),
            'b2': jnp.zeros((1, d_model), jnp.float32),
            'ln2_g': jnp.ones((1, d_model), jnp.float32),
            'ln2_b': jnp.zeros((1, d_model), jnp.float32),
        })
    return params


def xlnet_forward(params, x, segs, mask, *, n_head, d_head, q_tile=128):
    """Equivalent of Xlnet.forward(x, segs, mask) -> top_vec of shape (B, S, D)."""
    B, S = x.shape
    D = params['word_emb'].shape[1]
    q_tile = min(q_tile, S)
    assert S % q_tile == 0

    # glue: embedding gather + tiny static tables (no hot compute here)
    h = jnp.take(params['word_emb'], x, axis=0)                 # (B, S, D) f32
    pos_tab, win_len = _rel_pos_table(S, q_tile, D)
    segf = segs.astype(jnp.float32)
    seg_col = segf.reshape(B, S, 1)
    seg_row = segf.reshape(B, 1, S)
    maskf = mask.astype(jnp.float32).reshape(B, 1, S)

    for lp in params['layers']:
        rk = _project_rel_pos(pos_tab, lp['wr'])                # (~2S, H*Dh), tiny
        h = _xlnet_layer_call(h, rk, seg_col, seg_row, maskf, lp,
                              n_head=n_head, d_head=d_head,
                              q_tile=q_tile, win_len=win_len)
    return h                                                    # top_vec


# ------------------------------------ main ------------------------------------

if __name__ == "__main__":
    B, S = 2, 16
    D, H, DH, FF, L, V = 32, 4, 8, 64, 2, 64

    key = jax.random.PRNGKey(0)
    kp, kx = jax.random.split(key)
    params = init_params(kp, n_layers=L, vocab=V, d_model=D,
                         n_head=H, d_head=DH, d_inner=FF)

    x = jax.random.randint(kx, (B, S), 1, V)          # token ids (0 = pad)
    x = x.at[1, 12:].set(0)                           # some padding in batch 1
    segs = jnp.concatenate([jnp.zeros((B, S // 2), jnp.int32),
                            jnp.ones((B, S // 2), jnp.int32)], axis=1)
    mask = (x != 0).astype(jnp.float32)               # 1 = real token, 0 = pad

    top_vec = xlnet_forward(params, x, segs, mask, n_head=H, d_head=DH, q_tile=8)
    jax.block_until_ready(top_vec)
    assert top_vec.shape == (B, S, D)
    print("KERNEL_OK")
</pallas_src>

<mosaic_0001>
module attributes {stable_mosaic.version = 11 : i64} {
  func.func @_rel_proj_kernel(%arg0: memref<136x32xf32, #tpu.memory_space<vmem>>, %arg1: memref<32x32xbf16, #tpu.memory_space<vmem>>, %arg2: memref<136x32xf32, #tpu.memory_space<vmem>>) attributes {dimension_semantics = [], scalar_prefetch = 0 : i64, scratch_operands = 0 : i64, tpu.core_type = #tpu.core_type<tc>} {
    %c0 = arith.constant 0 : index
    %c0_0 = arith.constant 0 : index
    %0 = vector.load %arg0[%c0, %c0_0] : memref<136x32xf32, #tpu.memory_space<vmem>>, vector<136x32xf32>
    %1 = arith.truncf %0 : vector<136x32xf32> to vector<136x32xbf16>
    %c0_1 = arith.constant 0 : index
    %c0_2 = arith.constant 0 : index
    %2 = vector.load %arg1[%c0_1, %c0_2] : memref<32x32xbf16, #tpu.memory_space<vmem>>, vector<32x32xbf16>
    %cst = arith.constant dense<0.000000e+00> : vector<136x32xf32>
    %3 = tpu.matmul %1, %2, %cst {dimension_numbers = #tpu.dot_dimension_numbers<[1], [0], [0], [1], [0, 0, 1, 1], [], []>} : vector<136x32xbf16>, vector<32x32xbf16>, vector<136x32xf32> -> vector<136x32xf32>
    %c0_3 = arith.constant 0 : index
    %c0_4 = arith.constant 0 : index
    %4 = vector.load %arg2[%c0_3, %c0_4] : memref<136x32xf32, #tpu.memory_space<vmem>>, vector<136x32xf32>
    tpu.vector_store %arg2[%c0_3, %c0_4], %3 {strides = array<i32>} : memref<136x32xf32, #tpu.memory_space<vmem>>, vector<136x32xf32>,
    return
  }
}

</mosaic_0001>

<bundles_post_ra>
// kernel: tpu_custom_call.1
= control target key start
LH: loop header
LB: loop body
LE: loop exit
PB: predicated region body
PF: predicated region fallthrough
CT: control target
= control target key end

     0   :  { %v277_v0 = vmov 0.0   ;;  %vm278_vm0 = vmmov 0   ;;  %vm54_vm1 = vcmask 261120   ;;  %s437_s1 = inlined_call_operand.vmem [shape: bf16[32,32], index: 1, kind: input, shape index: {}]   ;;  %s438_s0 = inlined_call_operand.vmem [shape: f32[136,32], index: 0, kind: input, shape index: {}]   ;;  %s439_s2 = inlined_call_operand.vmem [shape: f32[136,32], index: 2, kind: output, shape index: {}]  }
   0x1   :  { %229 = vmatprep.subr.bf16.mxu0 %v277_v0  ;;  %v275_v1 = vld [vmem:[%s437_s1] sm:$0xff]   ;;  %269 = vmatprep.subr.bf16.mxu1 %v277_v0  ;;  %v276_v2 = vld [vmem:[%s437_s1 + $0x8] sm:$0xff]   ;;  %v22_v5 = vld [vmem:[%s438_s0 + $0x50] sm:$0xff] }
   0x2   :  { %233 = vmatprep.mubr.msk.bf16.mxu0 %vm278_vm0, %v277_v0  ;;  %253 = vmatprep.mubr.msk.bf16.mxu1 %vm278_vm0, %v277_v0  ;;  %v12_v3 = vld [vmem:[%s438_s0] sm:$0xff]  ;;  %v13_v4 = vld [vmem:[%s438_s0 + $0x8] sm:$0xff]  ;;  %v23_v6 = vld [vmem:[%s438_s0 + $0x58] sm:$0xff] }
   0x3   :  { %230 = vmatpush3.bf16.msra.mxu0 %v275_v1  ;;  %271 = vmatpush3.bf16.msra.mxu1 %v275_v1  ;;  %v29_v7 = vpack.c.bf16 %v13_v4, %v12_v3  ;;  %v34_v8 = vpack.c.bf16 %v23_v6, %v22_v5  ;;  %v14_v9 = vld [vmem:[%s438_s0 + $0x10] sm:$0xff]  ;;  %v15_v10 = vld [vmem:[%s438_s0 + $0x18] sm:$0xff]  ;;  %v24_v11 = vld [vmem:[%s438_s0 + $0x60] sm:$0xff] }
   0x4   :  { %231 = vmatprep.subr.bf16.mxu0 %v277_v0  ;;  %270 = vmatprep.subr.bf16.mxu1 %v277_v0  ;;  %v25_v12 = vld [vmem:[%s438_s0 + $0x68] sm:$0xff]  ;;  %v30_v13 = vpack.c.bf16 %v15_v10, %v14_v9  ;;  %v16_v15 = vld [vmem:[%s438_s0 + $0x20] sm:$0xff]  ;;  %v26_v17 = vld [vmem:[%s438_s0 + $0x70] sm:$0xff] }
   0x5   :  { %v35_v14 = vpack.c.bf16 %v25_v12, %v24_v11  ;;  %v17_v16 = vld [vmem:[%s438_s0 + $0x28] sm:$0xff]  ;;  %v27_v18 = vld [vmem:[%s438_s0 + $0x78] sm:$0xff]  ;;  %v18_v21 = vld [vmem:[%s438_s0 + $0x30] sm:$0xff] }
   0x6   :  { %v31_v19 = vpack.c.bf16 %v17_v16, %v16_v15  ;;  %v36_v20 = vpack.c.bf16 %v27_v18, %v26_v17  ;;  %v19_v22 = vld [vmem:[%s438_s0 + $0x38] sm:$0xff]  ;;  %v28_v23 = vld [vmem:[%s438_s0 + $0x80] sm:$0xff]  ;;  %v21_v27 = vld [vmem:[%s438_s0 + $0x48] sm:$0xff] }
   0x7   :  { %232 = vmatpush3.bf16.msra.mxu0 %v276_v2  ;;  %272 = vmatpush3.bf16.msra.mxu1 %v276_v2  ;;  %v32_v24 = vpack.c.bf16 %v19_v22, %v18_v21  ;;  %v37_v25 = vpack.c.bf16 %v28_v23, %v28_v23  ;;  %v20_v26 = vld [vmem:[%s438_s0 + $0x40] sm:$0xff] }
   0x8   :  { %v33_v28 = vpack.c.bf16 %v21_v27, %v20_v26 }
   0xa   :  { %234 = vmatmul.mubr.msk.bf16.vlgmr.msra.gmra.mrb[0].mxu0 %vm54_vm1, %v29_v7  ;;  %254 = vmatmul.mubr.msk.bf16.vlgmr.msra.gmra.mrb[0].mxu1 %vm54_vm1, %v34_v8 }
   0xb   :  { %237 = vmatprep.mubr.msk.bf16.mxu0 %vm278_vm0, %v277_v0  ;;  %257 = vmatprep.mubr.msk.bf16.mxu1 %vm278_vm0, %v277_v0 }
  0x12   :  { %238 = vmatmul.mubr.msk.bf16.gmra.mrb[4].mxu0 %vm54_vm1, %v30_v13  ;;  %258 = vmatmul.mubr.msk.bf16.gmra.mrb[4].mxu1 %vm54_vm1, %v35_v14 }
  0x13   :  { %241 = vmatprep.mubr.msk.bf16.mxu0 %vm278_vm0, %v277_v0  ;;  %261 = vmatprep.mubr.msk.bf16.mxu1 %vm278_vm0, %v277_v0 }
  0x1a   :  { %242 = vmatmul.mubr.msk.bf16.gmra.mrb[8].mxu0 %vm54_vm1, %v31_v19  ;;  %262 = vmatmul.mubr.msk.bf16.gmra.mrb[8].mxu1 %vm54_vm1, %v36_v20 }
  0x1b   :  { %245 = vmatprep.mubr.msk.bf16.mxu0 %vm278_vm0, %v277_v0  ;;  %265 = vmatprep.mubr.msk.bf16.mxu1 %vm278_vm0, %v277_v0 }
  0x22   :  { %246 = vmatmul.mubr.msk.bf16.gmra.mrb[12].mxu0 %vm54_vm1, %v32_v24  ;;  %266 = vmatmul.mubr.msk.bf16.gmra.mrb[12].mxu1 %vm54_vm1, %v37_v25 }
  0x23   :  { %249 = vmatprep.mubr.msk.bf16.mxu0 %vm278_vm0, %v277_v0 }
  0x2a   :  { %250 = vmatmul.mubr.msk.bf16.gmra.mrb[16].mxu0 %vm54_vm1, %v33_v28 }
  0xdd   :  { %v116_v29 = vpop.f32.mrb[0].mxu0  ;;  %v156_v30 = vpop.f32.mrb[0].mxu1 }
  0xde   :  { %186 = vst.msk [vmem:[%s439_s2] sm:$0xff] %vm54_vm1, %v116_v29  ;;  %v235_v31 = vpop.f32.mrb[1].mxu0  ;;  %196 = vst.msk [vmem:[%s439_s2 + $0x50] sm:$0xff] %vm54_vm1, %v156_v30  ;;  %v255_v32 = vpop.f32.mrb[1].mxu1 }
  0xdf   :  { %v119_v33 = vpop.f32.mrb[2].mxu0  ;;  %v159_v34 = vpop.f32.mrb[2].mxu1 }
  0xe0   :  { %187 = vst.msk [vmem:[%s439_s2 + $0x8] sm:$0xff] %vm54_vm1, %v119_v33  ;;  %v236_v35 = vpop.f32.mrb[3].mxu0  ;;  %197 = vst.msk [vmem:[%s439_s2 + $0x58] sm:$0xff] %vm54_vm1, %v159_v34  ;;  %v256_v36 = vpop.f32.mrb[3].mxu1 }
  0xe5   :  { %v124_v37 = vpop.f32.mrb[4].mxu0  ;;  %v164_v38 = vpop.f32.mrb[4].mxu1 }
  0xe6   :  { %188 = vst.msk [vmem:[%s439_s2 + $0x10] sm:$0xff] %vm54_vm1, %v124_v37  ;;  %v239_v39 = vpop.f32.mrb[5].mxu0  ;;  %198 = vst.msk [vmem:[%s439_s2 + $0x60] sm:$0xff] %vm54_vm1, %v164_v38  ;;  %v259_v40 = vpop.f32.mrb[5].mxu1 }
  0xe7   :  { %v127_v41 = vpop.f32.mrb[6].mxu0  ;;  %v167_v42 = vpop.f32.mrb[6].mxu1 }
  0xe8   :  { %189 = vst.msk [vmem:[%s439_s2 + $0x18] sm:$0xff] %vm54_vm1, %v127_v41  ;;  %v240_v43 = vpop.f32.mrb[7].mxu0  ;;  %199 = vst.msk [vmem:[%s439_s2 + $0x68] sm:$0xff] %vm54_vm1, %v167_v42  ;;  %v260_v44 = vpop.f32.mrb[7].mxu1 }
  0xed   :  { %v132_v45 = vpop.f32.mrb[8].mxu0  ;;  %v172_v46 = vpop.f32.mrb[8].mxu1 }
  0xee   :  { %190 = vst.msk [vmem:[%s439_s2 + $0x20] sm:$0xff] %vm54_vm1, %v132_v45  ;;  %v243_v47 = vpop.f32.mrb[9].mxu0  ;;  %200 = vst.msk [vmem:[%s439_s2 + $0x70] sm:$0xff] %vm54_vm1, %v172_v46  ;;  %v263_v48 = vpop.f32.mrb[9].mxu1 }
  0xef   :  { %v135_v49 = vpop.f32.mrb[10].mxu0  ;;  %v175_v50 = vpop.f32.mrb[10].mxu1 }
  0xf0   :  { %191 = vst.msk [vmem:[%s439_s2 + $0x28] sm:$0xff] %vm54_vm1, %v135_v49  ;;  %v244_v51 = vpop.f32.mrb[11].mxu0  ;;  %201 = vst.msk [vmem:[%s439_s2 + $0x78] sm:$0xff] %vm54_vm1, %v175_v50  ;;  %v264_v52 = vpop.f32.mrb[11].mxu1 }
  0xf5   :  { %v140_v53 = vpop.f32.mrb[12].mxu0  ;;  %v180_v54 = vpop.f32.mrb[12].mxu1 }
  0xf6   :  { %192 = vst.msk [vmem:[%s439_s2 + $0x30] sm:$0xff] %vm54_vm1, %v140_v53  ;;  %v247_v55 = vpop.f32.mrb[13].mxu0  ;;  %202 = vst.msk [vmem:[%s439_s2 + $0x80] sm:$0xff] %vm54_vm1, %v180_v54  ;;  %v267_v56 = vpop.f32.mrb[13].mxu1 }
  0xf7   :  { %v143_v57 = vpop.f32.mrb[14].mxu0  ;;  %v183_v58 = vpop.f32.mrb[14].mxu1 }
  0xf8   :  { %193 = vst.msk [vmem:[%s439_s2 + $0x38] sm:$0xff] %vm54_vm1, %v143_v57  ;;  %v248_v59 = vpop.f32.mrb[15].mxu0  ;;  %v268_v60 = vpop.f32.mrb[15].mxu1 }
  0xfd   :  { %v148_v61 = vpop.f32.mrb[16].mxu0 }
  0xfe   :  { %194 = vst.msk [vmem:[%s439_s2 + $0x40] sm:$0xff] %vm54_vm1, %v148_v61  ;;  %v251_v62 = vpop.f32.mrb[17].mxu0 }
  0xff   :  { %v151_v63 = vpop.f32.mrb[18].mxu0 }
 0x100   :  { %195 = vst.msk [vmem:[%s439_s2 + $0x48] sm:$0xff] %vm54_vm1, %v151_v63  ;;  %v252_v0 = vpop.f32.mrb[19].mxu0 }

</bundles_post_ra>
